<compile_context>
chip_gen: v7x
topology: tpu7x:2x2x1
jax: 0.10.0
libtpu: 0.0.40
codegen_flags: <defaults>
</compile_context>

<pallas_src>
import math
import functools

import jax
import jax.numpy as jnp
from jax import lax
from jax.experimental import pallas as pl
from jax.experimental.pallas import tpu as pltpu

NEG_INF = -1e30  # large finite mask value: exp() underflows to 0, no inf-inf risk


def _layer_norm(x, gamma, beta, eps=1e-5):
    mu = jnp.mean(x, axis=-1, keepdims=True)
    var = jnp.mean((x - mu) ** 2, axis=-1, keepdims=True)
    return (x - mu) * lax.rsqrt(var + eps) * gamma + beta


# ---------------------------------------------------------------------------
# Pass 1: LayerNorm-1 + fused full-width QKV projection
# ---------------------------------------------------------------------------
def qkv_kernel(x_ref, g1_ref, b1_ref, wqkv_ref, bqkv_ref, q_ref, k_ref, v_ref):
    N = x_ref.shape[-1]
    h = _layer_norm(x_ref[0], g1_ref[...], b1_ref[...]).astype(jnp.bfloat16)
    qkv = jnp.dot(h, wqkv_ref[...], preferred_element_type=jnp.float32) + bqkv_ref[...]
    q_ref[0] = qkv[:, :N].astype(jnp.bfloat16)
    k_ref[0] = qkv[:, N:2 * N].astype(jnp.bfloat16)
    v_ref[0] = qkv[:, 2 * N:].astype(jnp.bfloat16)


# ---------------------------------------------------------------------------
# Pass 2: causal flash attention + output projection + LN2 + fused MLP
# ---------------------------------------------------------------------------
def attn_mlp_kernel(n_head,
                    x_ref, q_ref, k_ref, v_ref,
                    wproj_ref, bproj_ref, g2_ref, b2_ref, wmlp_ref, bmlp_ref,
                    o_ref,
                    m_sc, l_sc, acc_sc):
    tl = q_ref.shape[1]
    tk = k_ref.shape[1]
    N = q_ref.shape[2]
    hd = N // n_head
    scale = 1.0 / math.sqrt(hd)
    qi = pl.program_id(1)
    ki = pl.program_id(2)

    @pl.when(ki == 0)
    def _():
        m_sc[...] = jnp.full(m_sc.shape, NEG_INF, m_sc.dtype)
        l_sc[...] = jnp.zeros(l_sc.shape, l_sc.dtype)
        acc_sc[...] = jnp.zeros(acc_sc.shape, acc_sc.dtype)

    # Causal skip: KV blocks strictly above the diagonal do no compute (and
    # their BlockSpec index is clamped, so they are not re-fetched either).
    @pl.when(ki <= qi)
    def _():
        q_all = q_ref[0]                      # (tl, N) bf16, heads in lanes
        k_all = k_ref[0]                      # (tk, N) bf16
        v_all = v_ref[0]                      # (tk, N) bf16

        # causal mask for this (q-tile, kv-block) pair, hoisted out of head loop
        row = lax.broadcasted_iota(jnp.int32, (tl, tk), 0) + qi * tl
        col = lax.broadcasted_iota(jnp.int32, (tl, tk), 1) + ki * tk
        keep = row >= col

        # TODO(synk): for n_head >> 8, switch to lax.fori_loop(..., unroll=small)
        for h in range(n_head):
            lo = h * hd
            q_h = q_all[:, lo:lo + hd]
            k_h = k_all[:, lo:lo + hd]
            v_h = v_all[:, lo:lo + hd]
            # NT matmul: contract the head dims, no materialized transpose
            s = lax.dot_general(q_h, k_h, (((1,), (1,)), ((), ())),
                                preferred_element_type=jnp.float32) * scale
            s = jnp.where(keep, s, NEG_INF)
            m_prev = m_sc[h]                                       # (tl, 1)
            l_prev = l_sc[h]
            m_new = jnp.maximum(m_prev, jnp.max(s, axis=-1, keepdims=True))
            alpha = jnp.exp(m_prev - m_new)
            p = jnp.exp(s - m_new)
            l_sc[h] = alpha * l_prev + jnp.sum(p, axis=-1, keepdims=True)
            acc_sc[h] = alpha * acc_sc[h] + jnp.dot(
                p.astype(jnp.bfloat16), v_h, preferred_element_type=jnp.float32)
            m_sc[h] = m_new

    @pl.when(ki == pl.num_programs(2) - 1)
    def _():
        # normalize, re-fold heads into lanes -> single full-width projection
        parts = [acc_sc[h] * pl.reciprocal(l_sc[h], approx=True)
                 for h in range(n_head)]
        y = jnp.concatenate(parts, axis=-1).astype(jnp.bfloat16)      # (tl, N)
        proj = jnp.dot(y, wproj_ref[...],
                       preferred_element_type=jnp.float32) + bproj_ref[...]
        x1 = x_ref[0] + proj                                          # residual 1
        # ln_2 + MLP (fc1@fc2 fused offline; GELU applied after fc2 per ModuleList)
        r = _layer_norm(x1, g2_ref[...], b2_ref[...]).astype(jnp.bfloat16)
        z = jnp.dot(r, wmlp_ref[...],
                    preferred_element_type=jnp.float32) + bmlp_ref[...]
        z = 0.5 * z * (1.0 + lax.erf(z * (1.0 / math.sqrt(2.0))))     # exact GELU
        # TODO(synk): Dropout is stochastic in train mode; identity here (eval).
        o_ref[0] = (z + x1).astype(o_ref.dtype)


# ---------------------------------------------------------------------------
# Offline parameter preparation
# ---------------------------------------------------------------------------
def prepare_params(raw_params, n_head):
    (g1, b1, wqkv, bqkv, wproj, bproj, g2, b2, wfc1, bfc1, wfc2, bfc2) = raw_params
    bf = jnp.bfloat16
    # fc1 -> fc2 with no nonlinearity in between (GELU comes only after fc2 in
    # the reference ModuleList), so the two Linears fuse into one (N, N) matmul.
    wmlp = wfc1 @ wfc2
    bmlp = bfc1 @ wfc2 + bfc2
    return (g1, b1,
            wqkv.astype(bf), bqkv,
            wproj.astype(bf), bproj,
            g2, b2,
            wmlp.astype(bf), bmlp)


# ---------------------------------------------------------------------------
# Wrapper
# ---------------------------------------------------------------------------
def encoder_forward(x, params, n_head, block=128):
    (g1, b1, wqkv, bqkv, wproj, bproj, g2, b2, wmlp, bmlp) = params
    B, L, N = x.shape
    assert N % n_head == 0
    hd = N // n_head
    tl = min(block, L)
    assert L % tl == 0 and tl % 16 == 0, "tile must divide L and be sublane-aligned"
    T = L // tl
    bf = jnp.bfloat16

    # ---- pass 1: LN1 + QKV projection (grid fully parallel) ----
    q, k, v = pl.pallas_call(
        qkv_kernel,
        out_shape=tuple(jax.ShapeDtypeStruct((B, L, N), bf) for _ in range(3)),
        grid_spec=pltpu.PrefetchScalarGridSpec(
            num_scalar_prefetch=0,
            grid=(B, T),
            in_specs=[
                pl.BlockSpec((1, tl, N), lambda b, i: (b, i, 0)),    # x tile
                pl.BlockSpec((1, N), lambda b, i: (0, 0)),           # ln1 gamma
                pl.BlockSpec((1, N), lambda b, i: (0, 0)),           # ln1 beta
                pl.BlockSpec((N, 3 * N), lambda b, i: (0, 0)),       # W_qkv (bf16)
                pl.BlockSpec((1, 3 * N), lambda b, i: (0, 0)),       # b_qkv
            ],
            out_specs=tuple(pl.BlockSpec((1, tl, N), lambda b, i: (b, i, 0))
                            for _ in range(3)),
        ),
        compiler_params=pltpu.CompilerParams(
            dimension_semantics=("parallel", "parallel")),
        cost_estimate=pl.CostEstimate(
            flops=2 * B * L * N * 3 * N,
            transcendentals=B * L,
            bytes_accessed=4 * B * L * N + 3 * 2 * B * L * N + 2 * 3 * N * N),
    )(x, g1, b1, wqkv, bqkv)

    # ---- pass 2: causal flash attention + proj + LN2 + fused MLP ----
    q_idx = lambda b, qi, ki: (b, qi, 0)
    kv_idx = lambda b, qi, ki: (b, jnp.minimum(ki, qi), 0)   # no fetch above diagonal
    const = lambda shape: pl.BlockSpec(shape, lambda b, qi, ki: (0,) * len(shape))

    out = pl.pallas_call(
        functools.partial(attn_mlp_kernel, n_head),
        out_shape=jax.ShapeDtypeStruct((B, L, N), x.dtype),
        grid_spec=pltpu.PrefetchScalarGridSpec(
            num_scalar_prefetch=0,
            grid=(B, T, T),
            in_specs=[
                pl.BlockSpec((1, tl, N), q_idx),    # x tile (residual path)
                pl.BlockSpec((1, tl, N), q_idx),    # q tile (bf16)
                pl.BlockSpec((1, tl, N), kv_idx),   # k block (bf16)
                pl.BlockSpec((1, tl, N), kv_idx),   # v block (bf16)
                const((N, N)), const((1, N)),       # W_proj, b_proj
                const((1, N)), const((1, N)),       # ln2 gamma, beta
                const((N, N)), const((1, N)),       # fused MLP weight, bias
            ],
            out_specs=pl.BlockSpec((1, tl, N), q_idx),
            scratch_shapes=[
                pltpu.VMEM((n_head, tl, 1), jnp.float32),    # running max
                pltpu.VMEM((n_head, tl, 1), jnp.float32),    # running sum
                pltpu.VMEM((n_head, tl, hd), jnp.float32),   # per-head accumulator
            ],
        ),
        compiler_params=pltpu.CompilerParams(
            dimension_semantics=("parallel", "parallel", "arbitrary")),
        cost_estimate=pl.CostEstimate(
            flops=4 * B * L * L * N + 4 * B * L * N * N,
            transcendentals=B * n_head * L * L + B * L * N,
            bytes_accessed=2 * 4 * B * L * N + 3 * 2 * B * L * N + 2 * 2 * N * N),
    )(x, q, k, v, wproj, bproj, g2, b2, wmlp, bmlp)
    return out


# ---------------- pure-JAX reference (for correctness check) ----------------
def encoder_ref(x, raw_params, n_head):
    (g1, b1, wqkv, bqkv, wproj, bproj, g2, b2, wfc1, bfc1, wfc2, bfc2) = raw_params
    B, L, N = x.shape
    hd = N // n_head

    def ln(t, g, b):
        mu = t.mean(-1, keepdims=True)
        var = ((t - mu) ** 2).mean(-1, keepdims=True)
        return (t - mu) / jnp.sqrt(var + 1e-5) * g + b

    h = ln(x, g1, b1)
    qkv = h @ wqkv + bqkv
    q, k, v = jnp.split(qkv, 3, axis=-1)
    to_heads = lambda t: t.reshape(B, L, n_head, hd).transpose(0, 2, 1, 3)
    q, k, v = to_heads(q), to_heads(k), to_heads(v)
    att = (q @ k.transpose(0, 1, 3, 2)) / math.sqrt(hd)
    mask = jnp.tril(jnp.ones((L, L), bool))
    att = jnp.where(mask, att, -jnp.inf)
    p = jax.nn.softmax(att, axis=-1)
    y = (p @ v).transpose(0, 2, 1, 3).reshape(B, L, N)
    y = y @ wproj + bproj
    x1 = x + y
    r = ln(x1, g2, b2)
    r = r @ wfc1 + bfc1
    r = r @ wfc2 + bfc2
    r = 0.5 * r * (1.0 + lax.erf(r / math.sqrt(2.0)))
    return r + x1


if __name__ == "__main__":
    B, L, N, n_head = 2, 256, 128, 4
    key = jax.random.PRNGKey(0)
    ks = jax.random.split(key, 13)

    def init(k, shape, s=0.02):
        return jax.random.normal(k, shape, jnp.float32) * s

    x = jax.random.normal(ks[0], (B, L, N), jnp.float32)
    raw_params = (
        1.0 + 0.1 * jax.random.normal(ks[1], (1, N), jnp.float32),   # ln_1 gamma
        0.02 * jax.random.normal(ks[2], (1, N), jnp.float32),        # ln_1 beta
        init(ks[3], (N, 3 * N)),        # c_attn W^T (in, out)
        init(ks[4], (1, 3 * N)),        # c_attn b
        init(ks[5], (N, N)),            # c_proj W^T
        init(ks[6], (1, N)),            # c_proj b
        1.0 + 0.1 * jax.random.normal(ks[7], (1, N), jnp.float32),   # ln_2 gamma
        0.02 * jax.random.normal(ks[8], (1, N), jnp.float32),        # ln_2 beta
        init(ks[9], (N, 4 * N)),        # fc1 W^T
        init(ks[10], (1, 4 * N)),       # fc1 b
        init(ks[11], (4 * N, N)),       # fc2 W^T
        init(ks[12], (1, N)),           # fc2 b
    )

    params = prepare_params(raw_params, n_head)
    out = encoder_forward(x, params, n_head)
    out = jax.block_until_ready(out)

    ref = encoder_ref(x, raw_params, n_head)
    err = float(jnp.max(jnp.abs(out - ref)))
    assert jnp.allclose(out, ref, atol=5e-2, rtol=5e-2), f"max abs err = {err}"
    print("KERNEL_OK")
</pallas_src>

<mosaic_0001>
module attributes {stable_mosaic.version = 11 : i64} {
  func.func @qkv_kernel(%arg0: i32, %arg1: i32, %arg2: memref<1x128x128xf32, #tpu.memory_space<vmem>>, %arg3: memref<1x128xf32, #tpu.memory_space<vmem>>, %arg4: memref<1x128xf32, #tpu.memory_space<vmem>>, %arg5: memref<128x384xbf16, #tpu.memory_space<vmem>>, %arg6: memref<1x384xf32, #tpu.memory_space<vmem>>, %arg7: memref<1x128x128xbf16, #tpu.memory_space<vmem>>, %arg8: memref<1x128x128xbf16, #tpu.memory_space<vmem>>, %arg9: memref<1x128x128xbf16, #tpu.memory_space<vmem>>) attributes {dimension_semantics = [#tpu.dimension_semantics<parallel>, #tpu.dimension_semantics<parallel>], iteration_bounds = array<i64: 2, 2>, scalar_prefetch = 0 : i64, scratch_operands = 0 : i64, tpu.core_type = #tpu.core_type<tc>, window_params = [{transform_indices = @transform_0, window_bounds = array<i64: 1, 128, 128>}, {pipeline_mode = #tpu.pipeline_mode<synchronous>, transform_indices = @transform_1, window_bounds = array<i64: 1, 128>}, {pipeline_mode = #tpu.pipeline_mode<synchronous>, transform_indices = @transform_2, window_bounds = array<i64: 1, 128>}, {pipeline_mode = #tpu.pipeline_mode<synchronous>, transform_indices = @transform_3, window_bounds = array<i64: 128, 384>}, {pipeline_mode = #tpu.pipeline_mode<synchronous>, transform_indices = @transform_4, window_bounds = array<i64: 1, 384>}, {transform_indices = @transform_5, window_bounds = array<i64: 1, 128, 128>}, {transform_indices = @transform_6, window_bounds = array<i64: 1, 128, 128>}, {transform_indices = @transform_7, window_bounds = array<i64: 1, 128, 128>}]} {
    %c0 = arith.constant 0 : index
    %c0_0 = arith.constant 0 : index
    %c0_1 = arith.constant 0 : index
    %0 = vector.load %arg2[%c0, %c0_0, %c0_1] : memref<1x128x128xf32, #tpu.memory_space<vmem>>, vector<1x128x128xf32>
    %1 = vector.shape_cast %0 : vector<1x128x128xf32> to vector<128x128xf32>
    %c0_2 = arith.constant 0 : index
    %c0_3 = arith.constant 0 : index
    %2 = vector.load %arg3[%c0_2, %c0_3] : memref<1x128xf32, #tpu.memory_space<vmem>>, vector<1x128xf32>
    %c0_4 = arith.constant 0 : index
    %c0_5 = arith.constant 0 : index
    %3 = vector.load %arg4[%c0_4, %c0_5] : memref<1x128xf32, #tpu.memory_space<vmem>>, vector<1x128xf32>
    %cst = arith.constant dense<0.000000e+00> : vector<128xf32>
    %4 = vector.multi_reduction <add>, %1, %cst [1] : vector<128x128xf32> to vector<128xf32>
    %5 = vector.shape_cast %4 : vector<128xf32> to vector<128x1xf32>
    %cst_6 = arith.constant 1.280000e+02 : f32
    %6 = vector.broadcast %cst_6 : f32 to vector<128x1xf32>
    %7 = arith.divf %5, %6 : vector<128x1xf32>
    %8 = vector.broadcast %7 : vector<128x1xf32> to vector<128x128xf32>
    %9 = arith.subf %1, %8 : vector<128x128xf32>
    %10 = arith.mulf %9, %9 : vector<128x128xf32>
    %cst_7 = arith.constant dense<0.000000e+00> : vector<128xf32>
    %11 = vector.multi_reduction <add>, %10, %cst_7 [1] : vector<128x128xf32> to vector<128xf32>
    %12 = vector.shape_cast %11 : vector<128xf32> to vector<128x1xf32>
    %cst_8 = arith.constant 1.280000e+02 : f32
    %13 = vector.broadcast %cst_8 : f32 to vector<128x1xf32>
    %14 = arith.divf %12, %13 : vector<128x1xf32>
    %15 = vector.broadcast %7 : vector<128x1xf32> to vector<128x128xf32>
    %16 = arith.subf %1, %15 : vector<128x128xf32>
    %cst_9 = arith.constant 9.99999974E-6 : f32
    %17 = vector.broadcast %cst_9 : f32 to vector<128x1xf32>
    %18 = arith.addf %14, %17 : vector<128x1xf32>
    %19 = math.rsqrt %18 : vector<128x1xf32>
    %20 = vector.broadcast %19 : vector<128x1xf32> to vector<128x128xf32>
    %21 = arith.mulf %16, %20 : vector<128x128xf32>
    %22 = vector.broadcast %2 : vector<1x128xf32> to vector<128x128xf32>
    %23 = arith.mulf %21, %22 : vector<128x128xf32>
    %24 = vector.broadcast %3 : vector<1x128xf32> to vector<128x128xf32>
    %25 = arith.addf %23, %24 : vector<128x128xf32>
    %26 = arith.truncf %25 : vector<128x128xf32> to vector<128x128xbf16>
    %c0_10 = arith.constant 0 : index
    %c0_11 = arith.constant 0 : index
    %27 = vector.load %arg5[%c0_10, %c0_11] : memref<128x384xbf16, #tpu.memory_space<vmem>>, vector<128x384xbf16>
    %cst_12 = arith.constant dense<0.000000e+00> : vector<128x384xf32>
    %28 = tpu.matmul %26, %27, %cst_12 {dimension_numbers = #tpu.dot_dimension_numbers<[1], [0], [0], [1], [0, 0, 1, 1], [], []>} : vector<128x128xbf16>, vector<128x384xbf16>, vector<128x384xf32> -> vector<128x384xf32>
    %c0_13 = arith.constant 0 : index
    %c0_14 = arith.constant 0 : index
    %29 = vector.load %arg6[%c0_13, %c0_14] : memref<1x384xf32, #tpu.memory_space<vmem>>, vector<1x384xf32>
    %30 = vector.broadcast %29 : vector<1x384xf32> to vector<128x384xf32>
    %31 = arith.addf %28, %30 : vector<128x384xf32>
    %32 = vector.extract_strided_slice %31 {offsets = [0, 0], sizes = [128, 128], strides = [1, 1]} : vector<128x384xf32> to vector<128x128xf32>
    %33 = arith.truncf %32 : vector<128x128xf32> to vector<128x128xbf16>
    %c0_15 = arith.constant 0 : index
    %c0_16 = arith.constant 0 : index
    %c0_17 = arith.constant 0 : index
    %34 = vector.load %arg7[%c0_15, %c0_16, %c0_17] : memref<1x128x128xbf16, #tpu.memory_space<vmem>>, vector<1x128x128xbf16>
    %35 = vector.shape_cast %34 : vector<1x128x128xbf16> to vector<128x128xbf16>
    %36 = vector.shape_cast %33 : vector<128x128xbf16> to vector<1x128x128xbf16>
    tpu.vector_store %arg7[%c0_15, %c0_16, %c0_17], %36 {strides = array<i32>} : memref<1x128x128xbf16, #tpu.memory_space<vmem>>, vector<1x128x128xbf16>,
    %37 = vector.extract_strided_slice %31 {offsets = [0, 128], sizes = [128, 128], strides = [1, 1]} : vector<128x384xf32> to vector<128x128xf32>
    %38 = arith.truncf %37 : vector<128x128xf32> to vector<128x128xbf16>
    %c0_18 = arith.constant 0 : index
    %c0_19 = arith.constant 0 : index
    %c0_20 = arith.constant 0 : index
    %39 = vector.load %arg8[%c0_18, %c0_19, %c0_20] : memref<1x128x128xbf16, #tpu.memory_space<vmem>>, vector<1x128x128xbf16>
    %40 = vector.shape_cast %39 : vector<1x128x128xbf16> to vector<128x128xbf16>
    %41 = vector.shape_cast %38 : vector<128x128xbf16> to vector<1x128x128xbf16>
    tpu.vector_store %arg8[%c0_18, %c0_19, %c0_20], %41 {strides = array<i32>} : memref<1x128x128xbf16, #tpu.memory_space<vmem>>, vector<1x128x128xbf16>,
    %42 = vector.extract_strided_slice %31 {offsets = [0, 256], sizes = [128, 128], strides = [1, 1]} : vector<128x384xf32> to vector<128x128xf32>
    %43 = arith.truncf %42 : vector<128x128xf32> to vector<128x128xbf16>
    %c0_21 = arith.constant 0 : index
    %c0_22 = arith.constant 0 : index
    %c0_23 = arith.constant 0 : index
    %44 = vector.load %arg9[%c0_21, %c0_22, %c0_23] : memref<1x128x128xbf16, #tpu.memory_space<vmem>>, vector<1x128x128xbf16>
    %45 = vector.shape_cast %44 : vector<1x128x128xbf16> to vector<128x128xbf16>
    %46 = vector.shape_cast %43 : vector<128x128xbf16> to vector<1x128x128xbf16>
    tpu.vector_store %arg9[%c0_21, %c0_22, %c0_23], %46 {strides = array<i32>} : memref<1x128x128xbf16, #tpu.memory_space<vmem>>, vector<1x128x128xbf16>,
    return
  }
  func.func @transform_0(%arg0: i32, %arg1: i32) -> (i32, i32, i32) {
    %c0_i32 = arith.constant 0 : i32
    %c0_i32_0 = arith.constant 0 : i32
    return %arg0, %arg1, %c0_i32 : i32, i32, i32
  }
  func.func @transform_1(%arg0: i32, %arg1: i32) -> (i32, i32) {
    %c0_i32 = arith.constant 0 : i32
    %c0_i32_0 = arith.constant 0 : i32
    %c0_i32_1 = arith.constant 0 : i32
    return %c0_i32, %c0_i32_0 : i32, i32
  }
  func.func @transform_2(%arg0: i32, %arg1: i32) -> (i32, i32) {
    %c0_i32 = arith.constant 0 : i32
    %c0_i32_0 = arith.constant 0 : i32
    %c0_i32_1 = arith.constant 0 : i32
    return %c0_i32, %c0_i32_0 : i32, i32
  }
  func.func @transform_3(%arg0: i32, %arg1: i32) -> (i32, i32) {
    %c0_i32 = arith.constant 0 : i32
    %c0_i32_0 = arith.constant 0 : i32
    %c0_i32_1 = arith.constant 0 : i32
    return %c0_i32, %c0_i32_0 : i32, i32
  }
  func.func @transform_4(%arg0: i32, %arg1: i32) -> (i32, i32) {
    %c0_i32 = arith.constant 0 : i32
    %c0_i32_0 = arith.constant 0 : i32
    %c0_i32_1 = arith.constant 0 : i32
    return %c0_i32, %c0_i32_0 : i32, i32
  }
  func.func @transform_5(%arg0: i32, %arg1: i32) -> (i32, i32, i32) {
    %c0_i32 = arith.constant 0 : i32
    %c0_i32_0 = arith.constant 0 : i32
    return %arg0, %arg1, %c0_i32 : i32, i32, i32
  }
  func.func @transform_6(%arg0: i32, %arg1: i32) -> (i32, i32, i32) {
    %c0_i32 = arith.constant 0 : i32
    %c0_i32_0 = arith.constant 0 : i32
    return %arg0, %arg1, %c0_i32 : i32, i32, i32
  }
  func.func @transform_7(%arg0: i32, %arg1: i32) -> (i32, i32, i32) {
    %c0_i32 = arith.constant 0 : i32
    %c0_i32_0 = arith.constant 0 : i32
    return %arg0, %arg1, %c0_i32 : i32, i32, i32
  }
}

</mosaic_0001>

<bundles_post_ra>
// kernel: tpu_custom_call.1
= control target key start
LH: loop header
LB: loop body
LE: loop exit
PB: predicated region body
PF: predicated region fallthrough
CT: control target
= control target key end

     0   :  { %s2834_s0 = inlined_call_operand.hbm [shape: f32[2,256,128], index: 0, kind: input, shape index: {}]   ;;  %s2835_s1 = inlined_call_operand.vmem [shape: f32[1,128], index: 1, kind: input, shape index: {}]   ;;  %s2836_s2 = inlined_call_operand.vmem [shape: f32[1,128], index: 2, kind: input, shape index: {}]   ;;  %s2837_s3 = inlined_call_operand.hbm [shape: bf16[128,384], index: 3, kind: input, shape index: {}]   ;;  %s2838_s4 = inlined_call_operand.vmem [shape: f32[1,384], index: 4, kind: input, shape index: {}]   ;;  %s2839_s5 = inlined_call_operand.hbm [shape: bf16[2,256,128], index: 5, kind: output, shape index: {0}]   ;;  %s2840_s6 = inlined_call_operand.hbm [shape: bf16[2,256,128], index: 6, kind: output, shape index: {1}]   ;;  %s2841_s7 = inlined_call_operand.hbm [shape: bf16[2,256,128], index: 7, kind: output, shape index: {2}]  }
   0x1   :  { %2854 = sst [smem:[#allocation20_spill]] %s2834_s0 }
   0x2   :  { %2855 = sst [smem:[#allocation21_spill]] %s2837_s3 }
   0x3   :  { %2856 = sst [smem:[#allocation22_spill]] %s2839_s5 }
   0x4   :  { %2857 = sst [smem:[#allocation23_spill]] %s2840_s6 }
   0x5   :  { %2858 = sst [smem:[#allocation24_spill]] %s2841_s7 }
   0x6   :  { %13 = vsyncpa [#allocation3], 0 }
   0x7   :  { %15 = vsyncpa [#allocation3 + $0x1], 0 }
   0x8   :  { %16 = vsyncpa [#allocation6], 0 }
   0x9   :  { %17 = vsyncpa [#allocation4], 0 }
   0xa   :  { %19 = vsyncpa [#allocation4 + $0x1], 0 }
   0xb   :  { %20 = vsyncpa [#allocation9], 0 }
   0xc   :  { %22 = vsyncpa [#allocation9 + $0x1], 0  ;;  %s2244_s24 = smov 0   ;;  %s2246_s25 = smov 0  }
   0xd   :  { %s2248_s26 = smov 0   ;;  %s2250_s27 = smov 0  }
   0xe   :  { %s2252_s28 = smov 0   ;;  %s2254_s29 = smov 0  }
   0xf   :  { %s2256_s30 = smov 0   ;;  %s2258_s8 = smov 0  }
  0x10 LB: > { %2859 = sst [smem:[#allocation15_spill]] %s2162_s24  ;;  %s2285_s9 = sadd.s32 4294967295, %s2190_s8   ;;  %s2190_s8 = sphi %s2258_s8, %s28_s8   ;;  %s2186_s30 = sphi %s2256_s30, %s2895_s30   ;;  %s2182_s29 = sphi %s2254_s29, %s2888_s29   ;;  %s2178_s28 = sphi %s2252_s28, %s2894_s28   ;;  %s2174_s27 = sphi %s2250_s27, %s2893_s27   ;;  %s2170_s26 = sphi %s2248_s26, %s2892_s26   ;;  %s2166_s25 = sphi %s2246_s25, %s2891_s25   ;;  %s2162_s24 = sphi %s2244_s24, %s2890_s24  }
  0x11   : > { %2860 = sst [smem:[#allocation16_spill]] %s2182_s29  ;;  %s2845_s10 = sadd.s32 4294967294, %s2190_s8  }
  0x12   : > { %p62_p0 = scmp.ne.s32.totalorder %s2166_s25, %s2162_s24  ;;  %p2842_p1 = scmp.eq.s32.totalorder %s2285_s9, 0 }
  0x13   : > { %p178_p3 = scmp.eq.s32.totalorder %s2845_s10, 3  ;;  %p1462_p5 = scmp.ge.s32.totalorder %s2190_s8, 1 }
  0x14   : > { %p2296_p4 = por %p2842_p1, %p62_p0  ;;  %p241_p7 = scmp.lt.s32.totalorder %s2190_s8, 5 }
  0x15   : > { %p2301_p6 = por %p178_p3, %p62_p0  ;;  %s2192_s14 = smov [#allocation5]  }
  0x16   : > { %s2861_s11 = scalar_select %p2296_p4, 1, 0 }
  0x17   : > { %s2862_s12 = scalar_select %p2301_p6, 1, 0 }
  0x18   : > { %p2306_p8 = pnand %p1462_p5, %p241_p7  ;;  %s259_s15 = sshll.u32 %s2192_s14, 4  ;;  %s260_s15 = int_to_ptr.vmem [resolvable:$true] %s259_s15 }
  0x19   : > { %2863 = sst [smem:[#allocation17_spill]] %s2862_s12 }
  0x1a   : > { %s2864_s13 = scalar_select %p2306_p8, 1, 0 }
  0x1b   : > { %p1812_p9 = pneg %p2306_p8  ;;  %s2866_s3 = sld [smem:[#allocation21_spill]] }
  0x1d   : > { %p2314_p10 = pnand %p1812_p9, %p2842_p1 }
  0x1f   : > { %p1972_p12 = pneg %p2314_p10 }
  0x21   : > { %s1970_s19 = scalar_lea.hbm %s2866_s3, 3072 }
  0x22   : > { %p1971_p11 = scmp.ne.s32.totalorder %s2866_s3, %s1970_s19  ;;  %p1977_p3 = scmp.lt.u32.totalorder %s1970_s19, %s2866_s3 }
  0x24   : > { %p1973_p13 = pnand %p1972_p12, %p1971_p11 }
  0x26   : > { %p1974_p0 = pneg %p1973_p13 }
  0x28   : > { %p1979_p5 = pnand %p1977_p3, %p1974_p0 }
  0x2a   : > { %1982 = shalt.err (!%p1979_p5)
}
  0x2b   : > { %s1983_s14 = scalar_lea.vmem %s260_s15, 3072  ;;  %p1991_p2 = scmp.lt.s32.totalorder %s260_s15, %s260_s15 }
  0x2c   : > { %p1984_p7 = scmp.ne.s32.totalorder %s260_s15, %s1983_s14  ;;  %p1992_p6 = scmp.lt.s32.totalorder %s1983_s14, %s1983_s14 }
  0x2e   : > { %p1986_p9 = pnand %p1984_p7, %p1972_p12  ;;  %p1993_p4 = por %p1992_p6, %p1991_p2 }
  0x30   : > { %p1987_p1 = pneg %p1986_p9 }
  0x32   : > { %p1994_p8 = pnand %p1993_p4, %p1987_p1 }
  0x34   : > { %1997 = shalt.err (!%p1994_p8)
}
  0x35   : > { %s2193_s17 = smov 192   ;;  %s2194_s18 = smov 12  }
  0x36   : > { %1815 = dma.hbm_to_vmem [thread:$0]  (!%p2314_p10), %s2866_s3, 3072, %s260_s15, [#allocation6], %s2193_s17, %s2193_s17, %s2194_s18  }
  0x37   : > { %s37_s21 = sadd.s32 1, %s2182_s29  ;;  %s40_s22 = sadd.s32 1, %s2186_s30 }
  0x38   : > { %p38_p1 = scmp.ge.s32.totalorder %s37_s21, 2  ;;  %s49_s23 = sadd.s32 1, %s2170_s26 }
  0x39   : > { %p56_p2 = scmp.ne.s32.totalorder %s2170_s26, %s2166_s25  ;;  %p57_p4 = scmp.eq.s32.totalorder %s2190_s8, 0 }
  0x3a   : > { %s2897_s21 = smov (%p38_p1, %s37_s21), 0  ;;  %s2899_s22 = smov (!%p38_p1, %s40_s22), %s2186_s30 }
  0x3b   : > { %2867 = sst [smem:[#allocation18_spill]] %s2897_s21  ;;  %s45_s14 = ssub.s32 %s2182_s29, %s2897_s21 }
  0x3c   : > { %p42_p6 = scmp.ge.s32.totalorder %s2899_s22, 2  ;;  %p2868_p8 = scmp.eq.s32.totalorder %s2285_s9, 3 }
  0x3d   : > { %p2351_p10 = por %p57_p4, %p56_p2  ;;  %p1831_p12 = scmp.lt.s32.totalorder %s2190_s8, 4 }
  0x3e   : > { %p2347_p11 = por %p2868_p8, %p56_p2  ;;  %s2901_s22 = smov (%p42_p6, %s2899_s22), 0 }
  0x3f   : > { %2871 = sst [smem:[#allocation19_spill]] %s2901_s22  ;;  %s276_s17 = sand.u32 1, %s2170_s26  }
  0x40   : > { %s1466_s18 = sshll.u32 %s2182_s29, 4  ;;  %s44_s19 = ssub.s32 %s2186_s30, %s2901_s22 }
  0x41   : > { %s46_s20 = sor.u32 %s45_s14, %s44_s19  ;;  %s1465_s10 = sshll.u32 %s276_s17, 7 }
  0x42   : > { %p47_p13 = scmp.eq.s32.totalorder %s46_s20, 0  ;;  %s1467_s3 = sshll.u32 %s2186_s30, 5 }
  0x43   : > { %s280_s21 = scalar_lea.vmem [#allocation2], %s1465_s10  ;;  %s286_s7 = sadd.s32 %s1467_s3, %s1466_s18 }
  0x44   : > { %s289_s12 = sshll.u32 %s280_s21, 4  ;;  %s1468_s6 = sshll.u32 %s286_s7, 7  ;;  %s2366_s12 = int_to_ptr.vmem [resolvable:$true] %s289_s12 }
  0x45   : > { %s2364_s24 = scalar_select %p47_p13, %s2170_s26, %s49_s23  }
  0x46   : > { %p2372_p0 = pnand %p1831_p12, %p2351_p10  ;;  %s2873_s0 = sld [smem:[#allocation20_spill]] }
  0x47   : > { %s2381_s3 = scalar_lea.sflag [#allocation3], %s276_s17 }
  0x48   : > { %p2000_p5 = pneg %p2372_p0 }
  0x4c   : > { %s2379_s14 = scalar_lea.hbm %s2873_s0, %s1468_s6  ;;  %s2003_s21 = scalar_lea.hbm %s2873_s0, 8192 }
  0x4d   : > { %s1998_s7 = scalar_lea.hbm %s2379_s14, 2048  ;;  %p2004_p1 = scmp.lt.u32.totalorder %s2379_s14, %s2873_s0 }
  0x4e   : > { %p1999_p3 = scmp.ne.s32.totalorder %s2379_s14, %s1998_s7  ;;  %p2005_p2 = scmp.lt.u32.totalorder %s2003_s21, %s1998_s7 }
  0x4f   : > { %p2007_p6 = scmp.lt.u32.totalorder %s1998_s7, %s2379_s14 }
  0x50   : > { %p2001_p7 = pnand %p2000_p5, %p1999_p3  ;;  %p2006_p4 = por %p2005_p2, %p2004_p1 }
  0x52   : > { %p2002_p9 = pneg %p2001_p7  ;;  %p2008_p8 = por %p2007_p6, %p2006_p4 }
  0x54   : > { %p2009_p10 = pnand %p2008_p8, %p2002_p9 }
  0x56   : > { %2012 = shalt.err (!%p2009_p10)
}
  0x57   : > { %s2013_s23 = scalar_lea.vmem %s2366_s12, 2048  ;;  %s2195_s15 = smov [#allocation2]  }
  0x58   : > { %p2014_p12 = scmp.ne.s32.totalorder %s2366_s12, %s2013_s23  ;;  %s2018_s17 = sshll.u32 %s2195_s15, 4  ;;  %s2019_s17 = int_to_ptr.vmem [resolvable:$false] %s2018_s17 }
  0x59   : > { %s2020_s18 = scalar_lea.vmem %s2019_s17, 4096  ;;  %p2021_p7 = scmp.lt.s32.totalorder %s2366_s12, %s2019_s17 }
  0x5a   : > { %p2016_p13 = pnand %p2014_p12, %p2000_p5  ;;  %p2022_p1 = scmp.lt.s32.totalorder %s2020_s18, %s2013_s23 }
  0x5c   : > { %p2017_p3 = pneg %p2016_p13  ;;  %p2023_p2 = por %p2022_p1, %p2021_p7 }
  0x5e   : > { %p2024_p4 = pnand %p2023_p2, %p2017_p3 }
  0x60   : > { %2027 = shalt.err (!%p2024_p4)
}
  0x61   : > { %s2196_s19 = smov 128   ;;  %s2197_s20 = smov 8  }
  0x62   : > { %1819 = dma.hbm_to_vmem [thread:$0]  (!%p2372_p0), %s2379_s14, 2048, %s2366_s12, %s2381_s3, %s2196_s19, %s2196_s19, %s2197_s20  }
  0x63   : > { %p2874_p5 = scmp.ne.s32.totalorder %s2864_s13, 0 }
  0x64   : > { %s2412_s7 = sand.u32 (!%p2874_p5), 1, %s2166_s25   ;;  %p2875_p9 = scmp.ne.s32.totalorder (!%p2874_p5), %s2861_s11, 0 }
  0x65   : > { %301 = sbr.rel (%p2874_p5) target bundleno = 766 (0x2fe), region = 40  ;;  %s1470_s10 = sshll.u32 (!%p2874_p5), %s2412_s7, 7 }
  0x66   : > { %s304_s29 = scalar_lea.sflag (!%p2874_p5), [#allocation3], %s2412_s7  ;;  %s2416_s21 = scalar_lea.vmem (!%p2874_p5), [#allocation2], %s1470_s10 }
  0x6c   : > { %2145 = dma.done.wait (%p2875_p9), %s304_s29, 2048  }
  0x6d   : > { %2147 = vsyncadd (%p2875_p9), %s304_s29, 4294965248  ;;  %p2876_p0 = scmp.eq.s32.totalorder %s2285_s9, 0 }
  0x6f   : > { %2149 = dma.done.wait (%p2876_p0), [#allocation6], 3072   ;;  %p2877_p6 = pmov %p2876_p0 }
  0x70   : > { %v357_v0 = vld [vmem:[%s2416_s21] sm:$0xff]  ;;  %v359_v1 = vld [vmem:[%s2416_s21 + $0x10] sm:$0xff]  ;;  %v358_v2 = vld [vmem:[%s2416_s21 + $0x8] sm:$0xff]  ;;  %s1472_s6 = sshll.u32 %s2412_s7, 6  ;;  %s1552_s17 = sshll.u32 %s2174_s27, 4 }
  0x71   : > { %2151 = vsyncadd (%p2877_p6), [#allocation6], 4294964224  ;;  %375 = vadd.xlane.f32.xlu0 %v357_v0  ;;  %379 = vadd.xlane.f32.xlu1 %v359_v1  ;;  %v360_v3 = vld [vmem:[%s2416_s21 + $0x18] sm:$0xff]  ;;  %v361_v4 = vld [vmem:[%s2416_s21 + $0x20] sm:$0xff]  ;;  %s2622_s22 = scalar_lea.vmem [#allocation7], %s1472_s6  ;;  %s2627_s23 = scalar_lea.vmem [#allocation8], %s1472_s6 }
  0x72   : > { %v362_v5 = vld [vmem:[%s2416_s21 + $0x28] sm:$0xff]  ;;  %v363_v6 = vld [vmem:[%s2416_s21 + $0x30] sm:$0xff]  ;;  %v2434_v7 = vld [vmem:[%s2416_s21 + $0x38] sm:$0xff]  ;;  %s2632_s15 = scalar_lea.vmem [#allocation10], %s1472_s6  ;;  %s1553_s18 = sshll.u32 %s2178_s28, 5 }
  0x73   : > { %v2437_v8 = vld [vmem:[%s2416_s21 + $0x40] sm:$0xff]  ;;  %v2440_v9 = vld [vmem:[%s2416_s21 + $0x48] sm:$0xff]  ;;  %v2446_v10 = vld [vmem:[%s2416_s21 + $0x50] sm:$0xff]  ;;  %s1257_s19 = sshll.u32 %s2622_s22, 4  ;;  %s1275_s20 = sshll.u32 %s2627_s23, 4  ;;  %s2694_s19 = int_to_ptr.vmem [resolvable:$true] %s1257_s19  ;;  %s2696_s20 = int_to_ptr.vmem [resolvable:$true] %s1275_s20 }
  0x74   : > { %v2449_v11 = vld [vmem:[%s2416_s21 + $0x58] sm:$0xff]  ;;  %v2454_v12 = vld [vmem:[%s2416_s21 + $0x60] sm:$0xff]  ;;  %v2457_v13 = vld [vmem:[%s2416_s21 + $0x68] sm:$0xff]  ;;  %s1254_s10 = sadd.s32 %s1553_s18, %s1552_s17  ;;  %s1293_s27 = sshll.u32 %s2632_s15, 4  ;;  %s2714_s27 = int_to_ptr.vmem [resolvable:$true] %s1293_s27 }
  0x75   : > { %377 = vadd.xlane.f32.xlu0 %v358_v2  ;;  %381 = vadd.xlane.f32.xlu1 %v360_v3  ;;  %v2462_v14 = vld [vmem:[%s2416_s21 + $0x70] sm:$0xff]  ;;  %v2465_v15 = vld [vmem:[%s2416_s21 + $0x78] sm:$0xff]  ;;  %v1908_v17 = vld [vmem:[#allocation5] ss:$12 sps:$4 sm:$0xff]   ;;  %s1554_s29 = sshll.u32 %s1254_s10, 6  ;;  %s2878_s11 = sld [smem:[#allocation22_spill]] }
  0x76   : > { %v1906_v16 = vld [vmem:[#allocation5 + $0x4] ss:$12 sps:$4 sm:$0xff]   ;;  %v1909_v18 = vld [vmem:[#allocation5 + $0x1c] ss:$12 sps:$4 sm:$0xff]   ;;  %s2879_s3 = sld [smem:[#allocation23_spill]]  ;;  %s2880_s18 = sld [smem:[#allocation24_spill]] }
  0x77   : > { %v1911_v19 = vld [vmem:[#allocation5 + $0x8] ss:$12 sps:$4 sm:$0xff]   ;;  %781 = vmatprep.subr.bf16.mxu0 %v1906_v16  ;;  %v1912_v58 = vld [vmem:[#allocation5 + $0x18] ss:$12 sps:$4 sm:$0xff]   ;;  %s1232_s28 = scalar_lea.sflag [#allocation4], %s2412_s7  ;;  %s2028_s21 = scalar_lea.vmem %s2694_s19, 1024 }
  0x78   : > { %782 = vmatpush1.bf16.msra.mxu0 %v1908_v17  ;;  %1768 = vmatprep.subr.bf16.mxu1 %v1911_v19  ;;  %p2029_p8 = scmp.ne.s32.totalorder %s2694_s19, %s2028_s21  ;;  %s2199_s5 = smov [#allocation7]  }
  0x79   : > { %383 = vadd.xlane.f32.xlu0 %v361_v4  ;;  %385 = vadd.xlane.f32.xlu1 %v362_v5  ;;  %s2032_s0 = sshll.u32 %s2199_s5, 4  ;;  %s2033_s0 = int_to_ptr.vmem [resolvable:$false] %s2032_s0 }
  0x7a   : > { %783 = vmatprep.subr.bf16.mxu0 %v1909_v18  ;;  %1769 = vmatpush3.bf16.msra.mxu1 %v1911_v19  ;;  %v1917_v18 = vld [vmem:[#allocation5 + $0x4c] ss:$12 sps:$4 sm:$0xff]   ;;  %p2030_p10 = pnand %p2029_p8, %p2347_p11  ;;  %s2034_s13 = scalar_lea.vmem %s2033_s0, 2048 }
  0x7b   : > { %v1919_v19 = vld [vmem:[#allocation5 + $0x38] ss:$12 sps:$4 sm:$0xff]   ;;  %s2707_s12 = scalar_lea.hbm %s2878_s11, %s1554_s29  ;;  %p2035_p13 = scmp.lt.s32.totalorder %s2694_s19, %s2033_s0 }
  0x7c   : > { %784 = vmatpush1.bf16.msra.mxu0 %v1912_v58  ;;  %s2712_s6 = scalar_lea.hbm %s2879_s3, %s1554_s29  ;;  %s2720_s10 = scalar_lea.hbm %s2880_s18, %s1554_s29 }
  0x7d   : > { %387 = vadd.xlane.f32.xlu0 %v363_v6  ;;  %389 = vadd.xlane.f32.xlu1 %v2434_v7  ;;  %p2031_p12 = pneg %p2030_p10  ;;  %p2036_p3 = scmp.lt.s32.totalorder %s2034_s13, %s2028_s21 }
  0x7f   : > { %p2037_p7 = por %p2036_p3, %p2035_p13 }
  0x81   : > { %391 = vadd.xlane.f32.xlu0 %v2437_v8  ;;  %393 = vadd.xlane.f32.xlu1 %v2440_v9  ;;  %p2038_p1 = pnand %p2037_p7, %p2031_p12 }
  0x85   : > { %395 = vadd.xlane.f32.xlu0 %v2446_v10  ;;  %397 = vadd.xlane.f32.xlu1 %v2449_v11 }
  0x89   : > { %399 = vadd.xlane.f32.xlu0 %v2454_v12  ;;  %401 = vadd.xlane.f32.xlu1 %v2457_v13 }
  0x8d   : > { %403 = vadd.xlane.f32.xlu0 %v2462_v14  ;;  %405 = vadd.xlane.f32.xlu1 %v2465_v15 }
  0xfe   : > { %v376_v20 = vpop.xlane.xlu0 %375  ;;  %v380_v21 = vpop.xlane.xlu1 %379 }
  0xff   : > { %v408_v22 = vmul.f32 0.0078125, %v376_v20  ;;  %v410_v23 = vmul.f32 0.0078125, %v380_v21 }
 0x101   : > { %v2469_v24 = vsub.f32 %v357_v0, %v408_v22  ;;  %v2471_v25 = vsub.f32 %v359_v1, %v410_v23  ;;  %v1913_v0 = vld [vmem:[#allocation5 + $0x34] ss:$12 sps:$4 sm:$0xff]  }
 0x102   : > { %v378_v26 = vpop.xlane.xlu0 %377  ;;  %v382_v27 = vpop.xlane.xlu1 %381  ;;  %v1915_v1 = vld [vmem:[#allocation5 + $0x20] ss:$12 sps:$4 sm:$0xff]   ;;  %785 = vmatprep.subr.bf16.mxu0 %v1913_v0  ;;  %v1920_v22 = vld [vmem:[#allocation5 + $0x48] ss:$12 sps:$4 sm:$0xff]  }
 0x103   : > { %v409_v28 = vmul.f32 0.0078125, %v378_v26  ;;  %v440_v29 = vmul.f32 %v2469_v24, %v2469_v24  ;;  %v411_v30 = vmul.f32 0.0078125, %v382_v27  ;;  %v442_v33 = vmul.f32 %v2471_v25, %v2471_v25  ;;  %1770 = vmatprep.subr.bf16.mxu1 %v1915_v1 }
 0x104   : > { %1771 = vmatpush3.bf16.msra.mxu1 %v1915_v1 }
 0x105   : > { %v2475_v31 = vsub.f32 %v358_v2, %v409_v28  ;;  %456 = vadd.xlane.f32.xlu0 %v440_v29  ;;  %v2477_v32 = vsub.f32 %v360_v3, %v411_v30  ;;  %1772 = vmatprep.subr.bf16.mxu1 %v1919_v19  ;;  %v1921_v29 = vld [vmem:[#allocation5 + $0x64] ss:$12 sps:$4 sm:$0xff]  }
 0x106   : > { %v384_v34 = vpop.xlane.xlu0 %383  ;;  %v386_v35 = vpop.xlane.xlu1 %385  ;;  %v1923_v30 = vld [vmem:[#allocation5 + $0x50] ss:$12 sps:$4 sm:$0xff]  }
 0x107   : > { %v412_v36 = vmul.f32 0.0078125, %v384_v34  ;;  %v441_v37 = vmul.f32 %v2475_v31, %v2475_v31  ;;  %v413_v38 = vmul.f32 0.0078125, %v386_v35  ;;  %v443_v41 = vmul.f32 %v2477_v32, %v2477_v32  ;;  %v1927_v35 = vld [vmem:[#allocation5 + $0x68] ss:$12 sps:$4 sm:$0xff]  }
 0x108   : > { %1773 = vmatpush3.bf16.msra.mxu1 %v1919_v19 }
 0x109   : > { %v2483_v39 = vsub.f32 %v361_v4, %v412_v36  ;;  %460 = vadd.xlane.f32.xlu0 %v442_v33  ;;  %458 = vadd.xlane.f32.xlu1 %v441_v37  ;;  %v2485_v40 = vsub.f32 %v362_v5, %v413_v38  ;;  %v1924_v33 = vld [vmem:[#allocation5 + $0x60] ss:$12 sps:$4 sm:$0xff]   ;;  %v1928_v36 = vld [vmem:[#allocation5 + $0x78] ss:$12 sps:$4 sm:$0xff]  }
 0x10a   : > { %v388_v42 = vpop.xlane.xlu0 %387  ;;  %v390_v43 = vpop.xlane.xlu1 %389  ;;  %1774 = vmatprep.subr.bf16.mxu1 %v1923_v30  ;;  %v1929_v37 = vld [vmem:[#allocation5 + $0x94] ss:$12 sps:$4 sm:$0xff]  }
 0x10b   : > { %v414_v44 = vmul.f32 0.0078125, %v388_v42  ;;  %v444_v45 = vmul.f32 %v2483_v39, %v2483_v39  ;;  %v415_v46 = vmul.f32 0.0078125, %v390_v43  ;;  %v445_v49 = vmul.f32 %v2485_v40, %v2485_v40  ;;  %v1931_v38 = vld [vmem:[#allocation5 + $0x80] ss:$12 sps:$4 sm:$0xff]   ;;  %v1935_v43 = vld [vmem:[#allocation5 + $0x98] ss:$12 sps:$4 sm:$0xff]  }
 0x10c   : > { %1775 = vmatpush3.bf16.msra.mxu1 %v1923_v30  ;;  %v1933_v42 = vld [vmem:[#allocation5 + $0xac] ss:$12 sps:$4 sm:$0xff]  }
 0x10d   : > { %v2491_v47 = vsub.f32 %v363_v6, %v414_v44  ;;  %462 = vadd.xlane.f32.xlu1 %v443_v41  ;;  %464 = vadd.xlane.f32.xlu0 %v444_v45  ;;  %v2494_v48 = vsub.f32 %v2434_v7, %v415_v46  ;;  %v1916_v7 = vld [vmem:[#allocation5 + $0x30] ss:$12 sps:$4 sm:$0xff]   ;;  %v1936_v44 = vld [vmem:[#allocation5 + $0xa8] ss:$12 sps:$4 sm:$0xff]   ;;  %v2198_v46 = vmov 0  }
 0x10e   : > { %v392_v50 = vpop.xlane.xlu0 %391  ;;  %v394_v51 = vpop.xlane.xlu1 %393  ;;  %786 = vmatpush1.bf16.msra.mxu0 %v1916_v7  ;;  %1776 = vmatprep.subr.bf16.mxu1 %v1927_v35  ;;  %v1932_v41 = vld [vmem:[#allocation5 + $0x90] ss:$12 sps:$4 sm:$0xff]  }
 0x10f   : > { %v416_v52 = vmul.f32 0.0078125, %v392_v50  ;;  %v446_v53 = vmul.f32 %v2491_v47, %v2491_v47  ;;  %v417_v54 = vmul.f32 0.0078125, %v394_v51  ;;  %v447_v57 = vmul.f32 %v2494_v48, %v2494_v48  ;;  %787 = vmatprep.subr.bf16.mxu0 %v1917_v18  ;;  %v1937_v45 = vld [vmem:[#allocation5 + $0xb0] ss:$12 sps:$4 sm:$0xff]   ;;  %813 = vmatprep.mubr.bf16.mxu0 %v2198_v46 }
 0x110   : > { %1777 = vmatpush3.bf16.msra.mxu1 %v1927_v35 }
 0x111   : > { %v2501_v55 = vsub.f32 %v2437_v8, %v416_v52  ;;  %466 = vadd.xlane.f32.xlu1 %v445_v49  ;;  %468 = vadd.xlane.f32.xlu0 %v446_v53  ;;  %v2504_v56 = vsub.f32 %v2440_v9, %v417_v54 }
 0x112   : > { %v396_v59 = vpop.xlane.xlu0 %395  ;;  %v398_v60 = vpop.xlane.xlu1 %397  ;;  %788 = vmatpush1.bf16.msra.mxu0 %v1920_v22  ;;  %1778 = vmatprep.subr.bf16.mxu1 %v1931_v38  ;;  %v2547_v22 = vld [vmem:[%s2835_s1] ss:$0 sm:$0xff] }
 0x113   : > { %v418_v61 = vmul.f32 0.0078125, %v396_v59  ;;  %v448_v62 = vmul.f32 %v2501_v55, %v2501_v55  ;;  %v419_v63 = vmul.f32 0.0078125, %v398_v60  ;;  %v449_v4 = vmul.f32 %v2504_v56, %v2504_v56  ;;  %789 = vmatprep.subr.bf16.mxu0 %v1921_v29 }
 0x114   : > { %1779 = vmatpush3.bf16.msra.mxu1 %v1931_v38 }
 0x115   : > { %v2511_v2 = vsub.f32 %v2446_v10, %v418_v61  ;;  %470 = vadd.xlane.f32.xlu1 %v447_v57  ;;  %472 = vadd.xlane.f32.xlu0 %v448_v62  ;;  %v2514_v3 = vsub.f32 %v2449_v11, %v419_v63 }
 0x116   : > { %v400_v5 = vpop.xlane.xlu0 %399  ;;  %v402_v6 = vpop.xlane.xlu1 %401  ;;  %790 = vmatpush1.bf16.msra.mxu0 %v1924_v33  ;;  %1780 = vmatprep.subr.bf16.mxu1 %v1935_v43 }
 0x117   : > { %v420_v8 = vmul.f32 0.0078125, %v400_v5  ;;  %v450_v9 = vmul.f32 %v2511_v2, %v2511_v2  ;;  %v421_v16 = vmul.f32 0.0078125, %v402_v6  ;;  %v451_v17 = vmul.f32 %v2514_v3, %v2514_v3 }
 0x118   : > { %1781 = vmatpush3.bf16.msra.mxu1 %v1935_v43 }
 0x119   : > { %v2521_v10 = vsub.f32 %v2454_v12, %v420_v8  ;;  %474 = vadd.xlane.f32.xlu1 %v449_v4  ;;  %476 = vadd.xlane.f32.xlu0 %v450_v9  ;;  %v2524_v11 = vsub.f32 %v2457_v13, %v421_v16 }
 0x11a   : > { %v404_v20 = vpop.xlane.xlu0 %403  ;;  %v406_v21 = vpop.xlane.xlu1 %405  ;;  %1782 = vmatprep.subr.bf16.mxu1 %v1937_v45 }
 0x11b   : > { %v422_v23 = vmul.f32 0.0078125, %v404_v20  ;;  %v452_v26 = vmul.f32 %v2521_v10, %v2521_v10  ;;  %v423_v27 = vmul.f32 0.0078125, %v406_v21  ;;  %v453_v28 = vmul.f32 %v2524_v11, %v2524_v11 }
 0x11c   : > { %1783 = vmatpush3.bf16.msra.mxu1 %v1937_v45 }
 0x11d   : > { %v2531_v12 = vsub.f32 %v2462_v14, %v422_v23  ;;  %478 = vadd.xlane.f32.xlu1 %v451_v17  ;;  %480 = vadd.xlane.f32.xlu0 %v452_v26  ;;  %v2534_v13 = vsub.f32 %v2465_v15, %v423_v27  ;;  %v1925_v15 = vld [vmem:[#allocation5 + $0x7c] ss:$12 sps:$4 sm:$0xff]  }
 0x11e   : > { %791 = vmatprep.subr.bf16.mxu0 %v1925_v15  ;;  %v2554_v15 = vld [vmem:[%s2836_s2] ss:$0 sm:$0xff] }
 0x11f   : > { %v454_v34 = vmul.f32 %v2531_v12, %v2531_v12  ;;  %v455_v14 = vmul.f32 %v2534_v13, %v2534_v13  ;;  %792 = vmatpush1.bf16.msra.mxu0 %v1928_v36 }
 0x120   : > { %793 = vmatprep.subr.bf16.mxu0 %v1929_v37 }
 0x121   : > { %482 = vadd.xlane.f32.xlu1 %v453_v28  ;;  %484 = vadd.xlane.f32.xlu0 %v454_v34 }
 0x123   : > { %794 = vmatpush1.bf16.msra.mxu0 %v1932_v41 }
 0x124   : > { %795 = vmatprep.subr.bf16.mxu0 %v1933_v42 }
 0x125   : > { %486 = vadd.xlane.f32.xlu1 %v455_v14 }
 0x127   : > { %796 = vmatpush1.bf16.msra.mxu0 %v1936_v44 }
 0x192   : > { %v457_v49 = vpop.xlane.xlu0 %456 }
 0x193   : > { %v488_v50 = vmul.f32 0.0078125, %v457_v49 }
 0x195   : > { %v504_v51 = vadd.f32 1e-05, %v488_v50 }
 0x196   : > { %v459_v52 = vpop.xlane.xlu1 %458  ;;  %v461_v53 = vpop.xlane.xlu0 %460 }
 0x197   : > { %1938 = vrsqrt.f32 %v504_v51  ;;  %v489_v54 = vmul.f32 0.0078125, %v459_v52  ;;  %v490_v57 = vmul.f32 0.0078125, %v461_v53 }
 0x199   : > { %v505_v58 = vadd.f32 1e-05, %v489_v54  ;;  %v506_v59 = vadd.f32 1e-05, %v490_v57 }
 0x19a   : > { %v463_v60 = vpop.xlane.xlu1 %462  ;;  %v465_v61 = vpop.xlane.xlu0 %464 }
 0x19b   : > { %1940 = vrsqrt.f32 %v505_v58  ;;  %v491_v62 = vmul.f32 0.0078125, %v463_v60  ;;  %v492_v63 = vmul.f32 0.0078125, %v465_v61 }
 0x19c   : > { %1942 = vrsqrt.f32 %v506_v59 }
 0x19d   : > { %v507_v0 = vadd.f32 1e-05, %v491_v62  ;;  %v508_v1 = vadd.f32 1e-05, %v492_v63 }
 0x19e   : > { %v467_v4 = vpop.xlane.xlu1 %466  ;;  %v469_v5 = vpop.xlane.xlu0 %468 }
 0x19f   : > { %1944 = vrsqrt.f32 %v507_v0  ;;  %v493_v6 = vmul.f32 0.0078125, %v467_v4  ;;  %v494_v7 = vmul.f32 0.0078125, %v469_v5 }
 0x1a0   : > { %1946 = vrsqrt.f32 %v508_v1 }
 0x1a1   : > { %v1939_v8 = vpop.eup %1938  ;;  %v509_v9 = vadd.f32 1e-05, %v493_v6  ;;  %v510_v16 = vadd.f32 1e-05, %v494_v7 }
 0x1a2   : > { %v471_v17 = vpop.xlane.xlu1 %470  ;;  %v473_v18 = vpop.xlane.xlu0 %472  ;;  %v536_v19 = vmul.f32 %v1939_v8, %v2469_v24 }
 0x1a3   : > { %1948 = vrsqrt.f32 %v509_v9  ;;  %v495_v20 = vmul.f32 0.0078125, %v471_v17  ;;  %v496_v21 = vmul.f32 0.0078125, %v473_v18 }
 0x1a4   : > { %1950 = vrsqrt.f32 %v510_v16  ;;  %v558_v34 = vmul.f32 %v2547_v22, %v536_v19 }
 0x1a5   : > { %v1941_v23 = vpop.eup %1940  ;;  %v511_v26 = vadd.f32 1e-05, %v495_v20  ;;  %v512_v27 = vadd.f32 1e-05, %v496_v21 }
 0x1a6   : > { %v1943_v28 = vpop.eup %1942  ;;  %v475_v29 = vpop.xlane.xlu1 %474  ;;  %v537_v33 = vmul.f32 %v1941_v23, %v2475_v31  ;;  %v580_v45 = vadd.f32 %v2554_v15, %v558_v34 }
 0x1a7   : > { %v477_v30 = vpop.xlane.xlu0 %476  ;;  %1952 = vrsqrt.f32 %v511_v26  ;;  %v497_v24 = vmul.f32 0.0078125, %v475_v29  ;;  %v538_v35 = vmul.f32 %v1943_v28, %v2471_v25 }
 0x1a8   : > { %v498_v14 = vmul.f32 0.0078125, %v477_v30  ;;  %1954 = vrsqrt.f32 %v512_v27  ;;  %v559_v36 = vmul.f32 %v2547_v22, %v537_v33 }
 0x1a9   : > { %v1945_v37 = vpop.eup %1944  ;;  %v513_v38 = vadd.f32 1e-05, %v497_v24  ;;  %v560_v31 = vmul.f32 %v2547_v22, %v538_v35 }
 0x1aa   : > { %v514_v41 = vadd.f32 1e-05, %v498_v14  ;;  %v1947_v42 = vpop.eup %1946  ;;  %v479_v43 = vpop.xlane.xlu1 %478  ;;  %v581_v49 = vadd.f32 %v2554_v15, %v559_v36  ;;  %v539_v50 = vmul.f32 %v1945_v37, %v2477_v32 }
 0x1ab   : > { %v481_v44 = vpop.xlane.xlu0 %480  ;;  %1956 = vrsqrt.f32 %v513_v38  ;;  %v499_v51 = vmul.f32 0.0078125, %v479_v43  ;;  %v540_v54 = vmul.f32 %v1947_v42, %v2483_v39  ;;  %v582_v60 = vadd.f32 %v2554_v15, %v560_v31 }
 0x1ac   : > { %v500_v25 = vmul.f32 0.0078125, %v481_v44  ;;  %1958 = vrsqrt.f32 %v514_v41  ;;  %v596_v52 = vpack.c.bf16 %v581_v49, %v580_v45  ;;  %v561_v53 = vmul.f32 %v2547_v22, %v539_v50 }
 0x1ad   : > { %v1949_v57 = vpop.eup %1948  ;;  %v515_v58 = vadd.f32 1e-05, %v499_v51  ;;  %v562_v1 = vmul.f32 %v2547_v22, %v540_v54 }
 0x1ae   : > { %v516_v59 = vadd.f32 1e-05, %v500_v25  ;;  %v1951_v61 = vpop.eup %1950  ;;  %v483_v62 = vpop.xlane.xlu1 %482  ;;  %814 = vmatmul.mubr.bf16.vlgmr.msra.gmra.mrb[0].mxu0 %v596_v52  ;;  %1784 = vmatprep.mubr.bf16.mxu1 %v596_v52  ;;  %v583_v32 = vadd.f32 %v2554_v15, %v561_v53  ;;  %v541_v0 = vmul.f32 %v1949_v57, %v2485_v40 }
 0x1af   : > { %v485_v63 = vpop.xlane.xlu0 %484  ;;  %1960 = vrsqrt.f32 %v515_v58  ;;  %v501_v4 = vmul.f32 0.0078125, %v483_v62  ;;  %823 = vmatprep.mubr.bf16.mxu0 %v2198_v46  ;;  %v542_v39 = vmul.f32 %v1951_v61, %v2491_v47  ;;  %v584_v19 = vadd.f32 %v2554_v15, %v562_v1 }
 0x1b0   : > { %v502_v5 = vmul.f32 0.0078125, %v485_v63  ;;  %1962 = vrsqrt.f32 %v516_v59  ;;  %v597_v6 = vpack.c.bf16 %v583_v32, %v582_v60  ;;  %v563_v7 = vmul.f32 %v2547_v22, %v541_v0 }
 0x1b1   : > { %v1953_v8 = vpop.eup %1952  ;;  %v517_v9 = vadd.f32 1e-05, %v501_v4  ;;  %v564_v17 = vmul.f32 %v2547_v22, %v542_v39 }
 0x1b2   : > { %v518_v16 = vadd.f32 1e-05, %v502_v5  ;;  %v1955_v18 = vpop.eup %1954  ;;  %v487_v40 = vpop.xlane.xlu1 %486  ;;  %1785 = vmatmul.mubr.bf16.vlgmr.msra.gmra.mrb[0].mxu1 %v597_v6  ;;  %v585_v20 = vadd.f32 %v2554_v15, %v563_v7  ;;  %v543_v21 = vmul.f32 %v1953_v8, %v2494_v48 }
 0x1b3   : > { %1964 = vrsqrt.f32 %v517_v9  ;;  %v503_v47 = vmul.f32 0.0078125, %v487_v40  ;;  %v544_v23 = vmul.f32 %v1955_v18, %v2501_v55  ;;  %v586_v30 = vadd.f32 %v2554_v15, %v564_v17 }
 0x1b4   : > { %1966 = vrsqrt.f32 %v518_v16  ;;  %v598_v26 = vpack.c.bf16 %v585_v20, %v584_v19  ;;  %v565_v27 = vmul.f32 %v2547_v22, %v543_v21 }
 0x1b5   : > { %v1957_v28 = vpop.eup %1956  ;;  %v519_v29 = vadd.f32 1e-05, %v503_v47  ;;  %v566_v48 = vmul.f32 %v2547_v22, %v544_v23 }
 0x1b6   : > { %v1959_v33 = vpop.eup %1958  ;;  %824 = vmatmul.mubr.bf16.gmra.mrb[4].mxu0 %v597_v6  ;;  %1788 = vmatprep.mubr.bf16.mxu1 %v598_v26  ;;  %v587_v34 = vadd.f32 %v2554_v15, %v565_v27  ;;  %v545_v24 = vmul.f32 %v1957_v28, %v2504_v56 }
 0x1b7   : > { %1968 = vrsqrt.f32 %v519_v29  ;;  %833 = vmatprep.mubr.bf16.mxu0 %v2198_v46  ;;  %v546_v55 = vmul.f32 %v1959_v33, %v2511_v2  ;;  %v588_v41 = vadd.f32 %v2554_v15, %v566_v48 }
 0x1b8   : > { %v599_v14 = vpack.c.bf16 %v587_v34, %v586_v30  ;;  %v567_v35 = vmul.f32 %v2547_v22, %v545_v24 }
 0x1b9   : > { %v1961_v36 = vpop.eup %1960  ;;  %v568_v37 = vmul.f32 %v2547_v22, %v546_v55 }
 0x1ba   : > { %v1963_v38 = vpop.eup %1962  ;;  %1789 = vmatmul.mubr.bf16.gmra.mrb[4].mxu1 %v599_v14  ;;  %v589_v31 = vadd.f32 %v2554_v15, %v567_v35  ;;  %v547_v56 = vmul.f32 %v1961_v36, %v2514_v3 }
 0x1bb   : > { %v548_v42 = vmul.f32 %v1963_v38, %v2521_v10  ;;  %v590_v45 = vadd.f32 %v2554_v15, %v568_v37 }
 0x1bc   : > { %v600_v43 = vpack.c.bf16 %v589_v31, %v588_v41  ;;  %v569_v44 = vmul.f32 %v2547_v22, %v547_v56 }
 0x1bd   : > { %v1965_v2 = vpop.eup %1964  ;;  %v570_v25 = vmul.f32 %v2547_v22, %v548_v42 }
 0x1be   : > { %v1967_v49 = vpop.eup %1966  ;;  %834 = vmatmul.mubr.bf16.gmra.mrb[8].mxu0 %v598_v26  ;;  %1792 = vmatprep.mubr.bf16.mxu1 %v600_v43  ;;  %v591_v50 = vadd.f32 %v2554_v15, %v569_v44  ;;  %v549_v51 = vmul.f32 %v1965_v2, %v2524_v11 }
 0x1bf   : > { %843 = vmatprep.mubr.bf16.mxu0 %v2198_v46  ;;  %v550_v3 = vmul.f32 %v1967_v49, %v2531_v12  ;;  %v592_v54 = vadd.f32 %v2554_v15, %v570_v25 }
 0x1c0   : > { %v601_v10 = vpack.c.bf16 %v591_v50, %v590_v45  ;;  %v571_v52 = vmul.f32 %v2547_v22, %v549_v51 }
 0x1c1   : > { %v1969_v53 = vpop.eup %1968  ;;  %v572_v59 = vmul.f32 %v2547_v22, %v550_v3 }
 0x1c2   : > { %1793 = vmatmul.mubr.bf16.gmra.mrb[8].mxu1 %v601_v10  ;;  %v593_v57 = vadd.f32 %v2554_v15, %v571_v52  ;;  %v551_v58 = vmul.f32 %v1969_v53, %v2534_v13  ;;  %v638_v13 = vlaneseq }
 0x1c3   : > { %v594_v12 = vadd.f32 %v2554_v15, %v572_v59 }
 0x1c4   : > { %v602_v11 = vpack.c.bf16 %v593_v57, %v592_v54  ;;  %v573_v60 = vmul.f32 %v2547_v22, %v551_v58  ;;  %v639_v22 = vshrl.u32 %v638_v13, 7 }
 0x1c6   : > { %844 = vmatmul.mubr.bf16.gmra.mrb[12].mxu0 %v599_v14  ;;  %1796 = vmatprep.mubr.bf16.mxu1 %v602_v11  ;;  %v595_v61 = vadd.f32 %v2554_v15, %v573_v60  ;;  %v640_v63 = vsub.s32 0, %v639_v22  ;;  %v636_v15 = vld [vmem:[%s2838_s4] sm:$0x7]  ;;  %v644_v32 = vsub.s32 1, %v639_v22  ;;  %v648_v1 = vsub.s32 2, %v639_v22 }
 0x1c7   : > { %853 = vmatprep.mubr.bf16.mxu0 %v2198_v46 }
 0x1c8   : > { %v603_v62 = vpack.c.bf16 %v595_v61, %v594_v12  ;;  %v2611_v0 = vrot.slane %v636_v15, %v640_v63  ;;  %v2613_v5 = vrot.slane %v636_v15, %v644_v32  ;;  %v2618_v9 = vrot.slane %v636_v15, %v648_v1 }
 0x1ca   : > { %1797 = vmatmul.mubr.bf16.gmra.mrb[12].mxu1 %v603_v62 }
 0x1ce   : > { %854 = vmatmul.mubr.bf16.gmra.mrb[16].mxu0 %v600_v43 }
 0x1cf   : > { %863 = vmatprep.mubr.bf16.mxu0 %v2198_v46 }
 0x1d6   : > { %864 = vmatmul.mubr.bf16.gmra.mrb[20].mxu0 %v601_v10 }
 0x1d7   : > { %873 = vmatprep.mubr.bf16.mxu0 %v2198_v46 }
 0x1de   : > { %874 = vmatmul.mubr.bf16.gmra.mrb[24].mxu0 %v602_v11 }
 0x1df   : > { %883 = vmatprep.mubr.bf16.mxu0 %v2198_v46 }
 0x1e6   : > { %884 = vmatmul.mubr.bf16.gmra.mrb[28].mxu0 %v603_v62 }
 0x281   : > { %v815_v4 = vpop.f32.mrb[0].mxu0 }
 0x282   : > { %v817_v39 = vpop.f32.mrb[1].mxu0  ;;  %v816_v46 = vadd.f32 %v815_v4, %v2611_v0 }
 0x283   : > { %v819_v6 = vpop.f32.mrb[2].mxu0  ;;  %v818_v16 = vadd.f32 %v817_v39, %v2613_v5 }
 0x284   : > { %v820_v7 = vadd.f32 %v819_v6, %v2611_v0  ;;  %v821_v8 = vpop.f32.mrb[3].mxu0 }
 0x285   : > { %v822_v17 = vadd.f32 %v821_v8, %v2613_v5  ;;  %v1786_v18 = vpop.f32.mrb[0].mxu1 }
 0x286   : > { %v1614_v40 = vpack.c.bf16 %v820_v7, %v816_v46  ;;  %v928_v19 = vpop.f32.mrb[1].mxu1  ;;  %v937_v47 = vadd.f32 %v1786_v18, %v2618_v9 }
 0x287   : > { %v1654_v20 = vpack.c.bf16 %v822_v17, %v818_v16  ;;  %v1787_v21 = vpop.f32.mrb[2].mxu1  ;;  %v929_v27 = vadd.f32 %v928_v19, %v2618_v9 }
 0x288   : > { %1615 = vst [vmem:[%s2622_s22] sm:$0xff] %v1614_v40   ;;  %v940_v23 = vadd.f32 %v1787_v21, %v2618_v9  ;;  %v931_v26 = vpop.f32.mrb[3].mxu1 }
 0x289   : > { %1655 = vst [vmem:[%s2627_s23] sm:$0xff] %v1654_v20   ;;  %v932_v28 = vadd.f32 %v931_v26, %v2618_v9  ;;  %v825_v29 = vpop.f32.mrb[4].mxu0 }
 0x28a   : > { %v1699_v30 = vpack.c.bf16 %v940_v23, %v937_v47  ;;  %v827_v33 = vpop.f32.mrb[5].mxu0  ;;  %v826_v48 = vadd.f32 %v825_v29, %v2611_v0 }
 0x28b   : > { %v1694_v34 = vpack.c.bf16 %v932_v28, %v929_v27  ;;  %v829_v24 = vpop.f32.mrb[6].mxu0  ;;  %v828_v35 = vadd.f32 %v827_v33, %v2613_v5 }
 0x28c   : > { %1745 = vst [vmem:[%s2632_s15 + $0x8] sm:$0xff] %v1699_v30   ;;  %v830_v55 = vadd.f32 %v829_v24, %v2611_v0  ;;  %v831_v14 = vpop.f32.mrb[7].mxu0 }
 0x28d   : > { %1695 = vst [vmem:[%s2632_s15] sm:$0xff] %v1694_v34   ;;  %v832_v36 = vadd.f32 %v831_v14, %v2613_v5  ;;  %v1790_v37 = vpop.f32.mrb[4].mxu1 }
 0x28e   : > { %v1619_v38 = vpack.c.bf16 %v830_v55, %v826_v48  ;;  %v944_v41 = vpop.f32.mrb[5].mxu1  ;;  %v953_v42 = vadd.f32 %v1790_v37, %v2618_v9 }
 0x28f   : > { %v1659_v31 = vpack.c.bf16 %v832_v36, %v828_v35  ;;  %v1791_v56 = vpop.f32.mrb[6].mxu1  ;;  %v945_v2 = vadd.f32 %v944_v41, %v2618_v9 }
 0x290   : > { %1731 = vst [vmem:[%s2622_s22 + $0x8] sm:$0xff] %v1619_v38   ;;  %v956_v43 = vadd.f32 %v1791_v56, %v2618_v9  ;;  %v947_v44 = vpop.f32.mrb[7].mxu1 }
 0x291   : > { %1738 = vst [vmem:[%s2627_s23 + $0x8] sm:$0xff] %v1659_v31   ;;  %v948_v45 = vadd.f32 %v947_v44, %v2618_v9  ;;  %v835_v49 = vpop.f32.mrb[8].mxu0 }
 0x292   : > { %v1709_v50 = vpack.c.bf16 %v956_v43, %v953_v42  ;;  %v837_v51 = vpop.f32.mrb[9].mxu0  ;;  %v836_v10 = vadd.f32 %v835_v49, %v2611_v0 }
 0x293   : > { %v1704_v25 = vpack.c.bf16 %v948_v45, %v945_v2  ;;  %v839_v3 = vpop.f32.mrb[10].mxu0  ;;  %v838_v54 = vadd.f32 %v837_v51, %v2613_v5 }
 0x294   : > { %1747 = vst [vmem:[%s2632_s15 + $0x18] sm:$0xff] %v1709_v50   ;;  %v840_v52 = vadd.f32 %v839_v3, %v2611_v0  ;;  %v841_v53 = vpop.f32.mrb[11].mxu0 }
 0x295   : > { %1746 = vst [vmem:[%s2632_s15 + $0x10] sm:$0xff] %v1704_v25   ;;  %v842_v57 = vadd.f32 %v841_v53, %v2613_v5  ;;  %v1794_v58 = vpop.f32.mrb[8].mxu1 }
 0x296   : > { %v1624_v59 = vpack.c.bf16 %v840_v52, %v836_v10  ;;  %v960_v11 = vpop.f32.mrb[9].mxu1  ;;  %v969_v61 = vadd.f32 %v1794_v58, %v2618_v9 }
 0x297   : > { %v1664_v60 = vpack.c.bf16 %v842_v57, %v838_v54  ;;  %v1795_v12 = vpop.f32.mrb[10].mxu1  ;;  %v961_v22 = vadd.f32 %v960_v11, %v2618_v9 }
 0x298   : > { %1732 = vst [vmem:[%s2622_s22 + $0x10] sm:$0xff] %v1624_v59   ;;  %v972_v62 = vadd.f32 %v1795_v12, %v2618_v9  ;;  %v963_v13 = vpop.f32.mrb[11].mxu1 }
 0x299   : > { %1739 = vst [vmem:[%s2627_s23 + $0x10] sm:$0xff] %v1664_v60   ;;  %v964_v63 = vadd.f32 %v963_v13, %v2618_v9  ;;  %v845_v15 = vpop.f32.mrb[12].mxu0 }
 0x29a   : > { %v1719_v32 = vpack.c.bf16 %v972_v62, %v969_v61  ;;  %v847_v1 = vpop.f32.mrb[13].mxu0  ;;  %v846_v6 = vadd.f32 %v845_v15, %v2611_v0 }
 0x29b   : > { %v1714_v4 = vpack.c.bf16 %v964_v63, %v961_v22  ;;  %v849_v39 = vpop.f32.mrb[14].mxu0  ;;  %v848_v8 = vadd.f32 %v847_v1, %v2613_v5 }
 0x29c   : > { %1749 = vst [vmem:[%s2632_s15 + $0x28] sm:$0xff] %v1719_v32   ;;  %v850_v46 = vadd.f32 %v849_v39, %v2611_v0  ;;  %v851_v7 = vpop.f32.mrb[15].mxu0 }
 0x29d   : > { %1748 = vst [vmem:[%s2632_s15 + $0x20] sm:$0xff] %v1714_v4   ;;  %v852_v16 = vadd.f32 %v851_v7, %v2613_v5  ;;  %v1798_v17 = vpop.f32.mrb[12].mxu1 }
 0x29e   : > { %v1629_v18 = vpack.c.bf16 %v850_v46, %v846_v6  ;;  %v976_v40 = vpop.f32.mrb[13].mxu1  ;;  %v985_v21 = vadd.f32 %v1798_v17, %v2618_v9 }
 0x29f   : > { %v1669_v19 = vpack.c.bf16 %v852_v16, %v848_v8  ;;  %v1799_v20 = vpop.f32.mrb[14].mxu1  ;;  %v977_v26 = vadd.f32 %v976_v40, %v2618_v9 }
 0x2a0   : > { %1733 = vst [vmem:[%s2622_s22 + $0x18] sm:$0xff] %v1629_v18   ;;  %v988_v47 = vadd.f32 %v1799_v20, %v2618_v9  ;;  %v979_v23 = vpop.f32.mrb[15].mxu1 }
 0x2a1   : > { %1740 = vst [vmem:[%s2627_s23 + $0x18] sm:$0xff] %v1669_v19   ;;  %v980_v27 = vadd.f32 %v979_v23, %v2618_v9  ;;  %v855_v28 = vpop.f32.mrb[16].mxu0 }
 0x2a2   : > { %v1729_v29 = vpack.c.bf16 %v988_v47, %v985_v21  ;;  %v857_v30 = vpop.f32.mrb[17].mxu0  ;;  %v856_v24 = vadd.f32 %v855_v28, %v2611_v0 }
 0x2a3   : > { %v1724_v33 = vpack.c.bf16 %v980_v27, %v977_v26  ;;  %v859_v34 = vpop.f32.mrb[18].mxu0  ;;  %v858_v14 = vadd.f32 %v857_v30, %v2613_v5 }
 0x2a4   : > { %1751 = vst [vmem:[%s2632_s15 + $0x38] sm:$0xff] %v1729_v29   ;;  %v860_v48 = vadd.f32 %v859_v34, %v2611_v0  ;;  %v861_v55 = vpop.f32.mrb[19].mxu0 }
 0x2a5   : > { %1750 = vst [vmem:[%s2632_s15 + $0x30] sm:$0xff] %v1724_v33   ;;  %v862_v35 = vadd.f32 %v861_v55, %v2613_v5 }
 0x2a6   : > { %v1634_v9 = vpack.c.bf16 %v860_v48, %v856_v24 }
 0x2a7   : > { %v1674_v36 = vpack.c.bf16 %v862_v35, %v858_v14 }
 0x2a8   : > { %1734 = vst [vmem:[%s2622_s22 + $0x20] sm:$0xff] %v1634_v9  }
 0x2a9   : > { %1741 = vst [vmem:[%s2627_s23 + $0x20] sm:$0xff] %v1674_v36   ;;  %v865_v37 = vpop.f32.mrb[20].mxu0 }
 0x2aa   : > { %v867_v38 = vpop.f32.mrb[21].mxu0  ;;  %v866_v31 = vadd.f32 %v865_v37, %v2611_v0 }
 0x2ab   : > { %v869_v41 = vpop.f32.mrb[22].mxu0  ;;  %v868_v43 = vadd.f32 %v867_v38, %v2613_v5 }
 0x2ac   : > { %v870_v56 = vadd.f32 %v869_v41, %v2611_v0  ;;  %v871_v42 = vpop.f32.mrb[23].mxu0 }
 0x2ad   : > { %v872_v44 = vadd.f32 %v871_v42, %v2613_v5 }
 0x2ae   : > { %v1639_v2 = vpack.c.bf16 %v870_v56, %v866_v31 }
 0x2af   : > { %v1679_v45 = vpack.c.bf16 %v872_v44, %v868_v43 }
 0x2b0   : > { %1735 = vst [vmem:[%s2622_s22 + $0x28] sm:$0xff] %v1639_v2  }
 0x2b1   : > { %1742 = vst [vmem:[%s2627_s23 + $0x28] sm:$0xff] %v1679_v45   ;;  %v875_v49 = vpop.f32.mrb[24].mxu0 }
 0x2b2   : > { %v877_v50 = vpop.f32.mrb[25].mxu0  ;;  %v876_v25 = vadd.f32 %v875_v49, %v2611_v0 }
 0x2b3   : > { %v879_v51 = vpop.f32.mrb[26].mxu0  ;;  %v878_v52 = vadd.f32 %v877_v50, %v2613_v5 }
 0x2b4   : > { %v880_v3 = vadd.f32 %v879_v51, %v2611_v0  ;;  %v881_v10 = vpop.f32.mrb[27].mxu0 }
 0x2b5   : > { %v882_v53 = vadd.f32 %v881_v10, %v2613_v5 }
 0x2b6   : > { %v1644_v54 = vpack.c.bf16 %v880_v3, %v876_v25 }
 0x2b7   : > { %v1684_v57 = vpack.c.bf16 %v882_v53, %v878_v52 }
 0x2b8   : > { %1736 = vst [vmem:[%s2622_s22 + $0x30] sm:$0xff] %v1644_v54  }
 0x2b9   : > { %1743 = vst [vmem:[%s2627_s23 + $0x30] sm:$0xff] %v1684_v57   ;;  %v885_v58 = vpop.f32.mrb[28].mxu0 }
 0x2ba   : > { %v887_v59 = vpop.f32.mrb[29].mxu0  ;;  %v886_v60 = vadd.f32 %v885_v58, %v2611_v0 }
 0x2bb   : > { %v889_v11 = vpop.f32.mrb[30].mxu0  ;;  %v888_v62 = vadd.f32 %v887_v59, %v2613_v5 }
 0x2bc   : > { %v890_v12 = vadd.f32 %v889_v11, %v2611_v0  ;;  %v891_v61 = vpop.f32.mrb[31].mxu0 }
 0x2bd   : > { %v892_v13 = vadd.f32 %v891_v61, %v2613_v5 }
 0x2be   : > { %v1649_v22 = vpack.c.bf16 %v890_v12, %v886_v60 }
 0x2bf   : > { %v1689_v63 = vpack.c.bf16 %v892_v13, %v888_v62 }
 0x2c0   : > { %1737 = vst [vmem:[%s2622_s22 + $0x38] sm:$0xff] %v1649_v22  }
 0x2c1   : > { %1744 = vst [vmem:[%s2627_s23 + $0x38] sm:$0xff] %v1689_v63  }
 0x2c2   : > { %2041 = shalt.err (!%p2038_p1)
}
 0x2c3   : > { %s2042_s22 = scalar_lea.hbm %s2707_s12, 1024  ;;  %s2046_s14 = scalar_lea.hbm %s2878_s11, 4096 }
 0x2c4   : > { %p2043_p2 = scmp.ne.s32.totalorder %s2707_s12, %s2042_s22  ;;  %p2047_p9 = scmp.lt.u32.totalorder %s2707_s12, %s2878_s11 }
 0x2c5   : > { %p2048_p0 = scmp.lt.u32.totalorder %s2046_s14, %s2042_s22  ;;  %p2050_p8 = scmp.lt.u32.totalorder %s2042_s22, %s2707_s12 }
 0x2c6   : > { %p2044_p4 = pnand %p2043_p2, %p2347_p11 }
 0x2c7   : > { %p2049_p6 = por %p2048_p0, %p2047_p9 }
 0x2c8   : > { %p2045_p5 = pneg %p2044_p4 }
 0x2c9   : > { %p2051_p10 = por %p2050_p8, %p2049_p6 }
 0x2cb   : > { %p2052_p12 = pnand %p2051_p10, %p2045_p5 }
 0x2cd   : > { %2055 = shalt.err (!%p2052_p12)
}
 0x2ce   : > { %s2200_s17 = smov 64   ;;  %s2201_s21 = smov 4  }
 0x2cf   : > { %1806 = dma.vmem_to_hbm [thread:$0]  (%p2347_p11), %s2694_s19, 1024, %s2707_s12, %s1232_s28, %s2200_s17, %s2200_s17, %s2201_s21  }
 0x2d0   : > { %s2881_s5 = sand.u32 1, %s2285_s9   ;;  %s2056_s22 = scalar_lea.vmem %s2696_s20, 1024 }
 0x2d1   : > { %s2752_s13 = scalar_lea.sflag [#allocation9], %s2881_s5  ;;  %p2057_p13 = scmp.ne.s32.totalorder %s2696_s20, %s2056_s22 }
 0x2d2   : > { %s2202_s23 = smov [#allocation8]  }
 0x2d3   : > { %p2058_p3 = pnand %p2057_p13, %p2347_p11  ;;  %s2060_s29 = sshll.u32 %s2202_s23, 4  ;;  %s2061_s29 = int_to_ptr.vmem [resolvable:$false] %s2060_s29 }
 0x2d4   : > { %s2062_s14 = scalar_lea.vmem %s2061_s29, 2048  ;;  %p2063_p1 = scmp.lt.s32.totalorder %s2696_s20, %s2061_s29 }
 0x2d5   : > { %p2059_p7 = pneg %p2058_p3  ;;  %p2064_p2 = scmp.lt.s32.totalorder %s2062_s14, %s2056_s22 }
 0x2d7   : > { %p2065_p4 = por %p2064_p2, %p2063_p1 }
 0x2d9   : > { %p2066_p5 = pnand %p2065_p4, %p2059_p7 }
 0x2db   : > { %2069 = shalt.err (!%p2066_p5)
}
 0x2dc   : > { %s2070_s9 = scalar_lea.hbm %s2712_s6, 1024  ;;  %s2074_s28 = scalar_lea.hbm %s2879_s3, 4096 }
 0x2dd   : > { %p2071_p9 = scmp.ne.s32.totalorder %s2712_s6, %s2070_s9  ;;  %p2075_p8 = scmp.lt.u32.totalorder %s2712_s6, %s2879_s3 }
 0x2de   : > { %p2076_p10 = scmp.lt.u32.totalorder %s2074_s28, %s2070_s9  ;;  %p2078_p13 = scmp.lt.u32.totalorder %s2070_s9, %s2712_s6 }
 0x2df   : > { %p2072_p0 = pnand %p2071_p9, %p2347_p11 }
 0x2e0   : > { %p2077_p12 = por %p2076_p10, %p2075_p8 }
 0x2e1   : > { %p2073_p6 = pneg %p2072_p0 }
 0x2e2   : > { %p2079_p3 = por %p2078_p13, %p2077_p12 }
 0x2e4   : > { %p2080_p7 = pnand %p2079_p3, %p2073_p6 }
 0x2e6   : > { %2083 = shalt.err (!%p2080_p7)
}
 0x2e7   : > { %1807 = dma.vmem_to_hbm [thread:$0]  (%p2347_p11), %s2696_s20, 1024, %s2712_s6, %s2752_s13, %s2200_s17, %s2200_s17, %s2201_s21  }
 0x2e8   : > { %s2084_s0 = scalar_lea.vmem %s2714_s27, 1024  ;;  %s2203_s5 = smov [#allocation10]  }
 0x2e9   : > { %p2085_p1 = scmp.ne.s32.totalorder %s2714_s27, %s2084_s0  ;;  %s2088_s22 = sshll.u32 %s2203_s5, 4  ;;  %s2089_s22 = int_to_ptr.vmem [resolvable:$false] %s2088_s22 }
 0x2ea   : > { %s2090_s23 = scalar_lea.vmem %s2089_s22, 2048  ;;  %p2091_p5 = scmp.lt.s32.totalorder %s2714_s27, %s2089_s22 }
 0x2eb   : > { %p2086_p2 = pnand %p2085_p1, %p2347_p11  ;;  %p2092_p9 = scmp.lt.s32.totalorder %s2090_s23, %s2084_s0 }
 0x2ed   : > { %p2087_p4 = pneg %p2086_p2  ;;  %p2093_p0 = por %p2092_p9, %p2091_p5 }
 0x2ef   : > { %p2094_p6 = pnand %p2093_p0, %p2087_p4 }
 0x2f1   : > { %2097 = shalt.err (!%p2094_p6)
}
 0x2f2   : > { %s2098_s20 = scalar_lea.hbm %s2720_s10, 1024  ;;  %s2102_s14 = scalar_lea.hbm %s2880_s18, 4096 }
 0x2f3   : > { %p2099_p8 = scmp.ne.s32.totalorder %s2720_s10, %s2098_s20  ;;  %p2103_p13 = scmp.lt.u32.totalorder %s2720_s10, %s2880_s18 }
 0x2f4   : > { %p2104_p3 = scmp.lt.u32.totalorder %s2102_s14, %s2098_s20  ;;  %p2106_p1 = scmp.lt.u32.totalorder %s2098_s20, %s2720_s10 }
 0x2f5   : > { %p2100_p10 = pnand %p2099_p8, %p2347_p11 }
 0x2f6   : > { %p2105_p7 = por %p2104_p3, %p2103_p13 }
 0x2f7   : > { %p2101_p12 = pneg %p2100_p10 }
 0x2f8   : > { %p2107_p2 = por %p2106_p1, %p2105_p7 }
 0x2fa   : > { %p2108_p4 = pnand %p2107_p2, %p2101_p12 }
 0x2fc   : > { %2111 = shalt.err (!%p2108_p4)
}
 0x2fd   : > { %1808 = dma.vmem_to_hbm [thread:$0]  (%p2347_p11), %s2714_s27, 1024, %s2720_s10, %s2752_s13, %s2200_s17, %s2200_s17, %s2201_s21  }
 0x2fe PF: > { %s2882_s19 = sld [smem:[#allocation15_spill]]  ;;  %s2883_s28 = sld [smem:[#allocation17_spill]] }
 0x2ff   : > { %p1833_p5 = scmp.ge.s32.totalorder %s2190_s8, 2 }
 0x304   : > { %s1308_s12 = sand.u32 1, %s2882_s19   ;;  %p2884_p9 = scmp.ne.s32.totalorder %s2883_s28, 0 }
 0x305   : > { %s1309_s15 = scalar_lea.sflag [#allocation4], %s1308_s12 }
 0x306   : > { %p1821_p0 = pnand %p1833_p5, %p2884_p9 }
 0x308   : > { %2153 = dma.done.wait (!%p1821_p0), %s1309_s15, 1024  }
 0x309   : > { %2155 = vsyncadd (!%p1821_p0), %s1309_s15, 4294966272  ;;  %s2885_s16 = sadd.s32 4294967294, %s2190_s8  }
 0x30a   : > { %s1317_s0 = sand.u32 1, %s2885_s16  }
 0x30b   : > { %s1318_s5 = scalar_lea.sflag [#allocation9], %s1317_s0 }
 0x30c   : > { %2157 = dma.done.wait (!%p1821_p0), %s1318_s5, 2048  }
 0x30d   : > { %2159 = vsyncadd (!%p1821_p0), %s1318_s5, 4294965248  ;;  %s28_s8 = sadd.s32 1, %s2190_s8   ;;  %s2886_s27 = smov %s2364_s24 }
 0x30e   : > { %p25_p11 = scmp.ge.s32.totalorder %s28_s8, 6   ;;  %s2887_s10 = sld [smem:[#allocation16_spill]] }
 0x30f   : > { %s2888_s29 = sld [smem:[#allocation18_spill]]  ;;  %s2889_s17 = sld [smem:[#allocation19_spill]] }
 0x310   : > { %s2890_s24 = smov %s2166_s25  ;;  %s2891_s25 = smov %s2170_s26 }
 0x311   : > { %s2892_s26 = smov %s2886_s27  ;;  %s2894_s28 = smov %s2186_s30 }
 0x312   :  { %27 = sbr.rel (!%p25_p11) target bundleno = 16 (0x10), region = 121 }
 0x314   : > { %s2893_s27 = smov %s2887_s10 }
 0x315   : > { %s2895_s30 = smov %s2889_s17 }
 0x319   :  { %1332 = vsyncpa [#allocation3], 1 }
 0x31a   :  { %1334 = vsyncpa [#allocation3 + $0x1], 1 }
 0x31b   :  { %1335 = vsyncpa [#allocation6], 1 }
 0x31c   :  { %1336 = vsyncpa [#allocation4], 1 }
 0x31d   :  { %1338 = vsyncpa [#allocation4 + $0x1], 1 }
 0x31e   :  { %1339 = vsyncpa [#allocation9], 1 }
 0x31f   :  { %1341 = vsyncpa [#allocation9 + $0x1], 1 }

</bundles_post_ra>
